<compile_context>
chip_gen: v5e
topology: v5e:2x2
jax: 0.10.0
libtpu: 0.0.40
codegen_flags: <defaults>
</compile_context>

<pallas_src>
import jax
import jax.numpy as jnp
from jax.experimental import pallas as pl
from jax.experimental.pallas import tpu as pltpu

BN_EPS = 1e-5


def grf_conv_unit_kernel(x_ref, adj_ref, w1_ref, w2_ref, bn_ref, g_ref, p_ref, out_ref):
    H = w1_ref.shape[1]

    x = x_ref[...]        # [B*N, D]  flattened node features
    adj = adj_ref[...]    # [B*N, B*N] block-diagonal adjacency
    w1 = w1_ref[...]      # [D, H]
    w2 = w2_ref[...]      # [H, H]
    bn = bn_ref[...]      # [B*N, 4]  packed per-row (g1, b1, g2, b2)
    gmat = g_ref[...]     # [B*N, B*N] node-channel grouping matrix, pre-scaled by 1/(B*H)
    pmat = p_ref[...]     # [B, B*N]   sum-pool matrix

    g1 = bn[:, 0:1]
    b1 = bn[:, 1:2]
    g2 = bn[:, 2:3]
    b2 = bn[:, 3:4]

    ones_h = jnp.ones((H, 1), dtype=jnp.float32)  # lane-reduction vector for the MXU

    def batch_norm(h, gamma, beta):
        # PyTorch BatchNorm1d(num_features=N), training mode, biased variance.
        # Per-node-channel stats over (batch, hidden), computed as MXU matmuls:
        #   row_sum  = h @ ones_h                  -> [B*N, 1]
        #   mean     = G_scaled @ row_sum          -> [B*N, 1]  (already broadcast per row)
        mean = jnp.dot(gmat, jnp.dot(h, ones_h, preferred_element_type=jnp.float32),
                       preferred_element_type=jnp.float32)
        diff = h - mean
        var = jnp.dot(gmat, jnp.dot(diff * diff, ones_h, preferred_element_type=jnp.float32),
                      preferred_element_type=jnp.float32)
        scale = jax.lax.rsqrt(var + BN_EPS) * gamma          # [B*N, 1]
        shift = beta - mean * scale
        return h * scale + shift                             # fused affine, lane-broadcast

    # ---- conv1: (adj @ x) @ W1 -> [B*N, H] ----
    y = jnp.dot(adj, x, preferred_element_type=jnp.float32)
    h = jnp.dot(y, w1, preferred_element_type=jnp.float32)

    # ---- bn1 (training-mode batch statistics) + ReLU ----
    h = batch_norm(h, g1, b1)
    h = jnp.maximum(h, 0.0)

    # ---- conv2: (adj @ h) @ W2 -> [B*N, H] ----
    y = jnp.dot(adj, h, preferred_element_type=jnp.float32)
    h = jnp.dot(y, w2, preferred_element_type=jnp.float32)

    # ---- bn2 ----
    h = batch_norm(h, g2, b2)

    # ---- pool='sum' over node axis as an MXU matmul: P @ h -> [B, H] ----
    out_ref[...] = jnp.dot(pmat, h, preferred_element_type=jnp.float32).astype(out_ref.dtype)


def grf_conv_unit(feature, adj, w1, w2, g1, b1, g2, b2):
    B, N, D = feature.shape
    H = w1.shape[1]
    R = B * N  # flattened row count

    f32 = jnp.float32
    x_flat = feature.reshape(R, D).astype(f32)

    # Block-diagonal adjacency [B*N, B*N]: adj_bd[b*N+n, b'*N+m] = adj[b,n,m] * (b==b').
    eye_b = jnp.eye(B, dtype=f32)
    adj_bd = (eye_b[:, None, :, None] * adj.astype(f32)[:, :, None, :]).reshape(R, R)

    # Node-channel grouping matrix (sums rows sharing the same node index), pre-scaled
    # by 1/(B*H) so G @ (x @ ones) directly yields per-row means.
    gmat = jnp.tile(jnp.eye(N, dtype=f32), (B, B)) * (1.0 / float(B * H))

    # Sum-pool matrix: out[b] = sum_n x[b*N + n].
    pmat = jnp.repeat(jnp.eye(B, dtype=f32), N, axis=1)  # [B, B*N]

    # BN affine params tiled to rows and packed into one [B*N, 4] operand (single DMA).
    bn_params = jnp.stack(
        [jnp.tile(p.reshape(N).astype(f32), (B,)) for p in (g1, b1, g2, b2)], axis=1
    )  # [B*N, 4]

    # Advisory cost estimate so XLA can schedule around the custom call.
    flops = int(
        2 * R * R * D          # adj @ x        (conv1)
        + 2 * R * D * H        # y @ w1
        + 2 * R * R * H        # adj @ h        (conv2)
        + 2 * R * H * H        # y @ w2
        + 2 * (2 * R * H + 2 * R * R) * 2   # BN row-sums + grouping matmuls (x2 BN layers)
        + 2 * B * R * H        # pooling matmul
    )
    bytes_accessed = int(4 * (R * D + 2 * R * R + D * H + H * H + R * 4 + B * R + B * H))
    cost = pl.CostEstimate(flops=flops, transcendentals=2 * R, bytes_accessed=bytes_accessed)

    vmem = pl.BlockSpec(memory_space=pltpu.MemorySpace.VMEM)
    return pl.pallas_call(
        grf_conv_unit_kernel,
        out_shape=jax.ShapeDtypeStruct((B, H), f32),
        in_specs=[vmem] * 7,
        out_specs=vmem,
        cost_estimate=cost,
        compiler_params=pltpu.CompilerParams(vmem_limit_bytes=32 * 1024 * 1024),
    )(x_flat, adj_bd, w1.astype(f32), w2.astype(f32), bn_params, gmat, pmat)


def grf_conv_unit_ref(feature, adj, w1, w2, g1, b1, g2, b2):
    """Plain-JAX reference of the PyTorch forward (training-mode BN)."""
    def bn(x, gamma, beta):
        mean = jnp.mean(x, axis=(0, 2), keepdims=True)
        var = jnp.mean((x - mean) ** 2, axis=(0, 2), keepdims=True)
        return (x - mean) / jnp.sqrt(var + BN_EPS) * gamma[None] + beta[None]

    x = jnp.einsum('bnm,bmd->bnd', adj, feature) @ w1
    x = jnp.maximum(bn(x, g1, b1), 0.0)
    x = jnp.einsum('bnm,bmh->bnh', adj, x) @ w2
    x = bn(x, g2, b2)
    return jnp.sum(x, axis=1)


if __name__ == "__main__":
    key = jax.random.PRNGKey(0)
    B, N = 2, 16                 # batch, max_num_nodes
    input_dim, hidden_dim = 16, 32

    k1, k2, k3, k4 = jax.random.split(key, 4)
    feature = jax.random.normal(k1, (B, N, input_dim), dtype=jnp.float32)
    adj = jax.random.uniform(k2, (B, N, N), dtype=jnp.float32)
    adj = 0.5 * (adj + jnp.transpose(adj, (0, 2, 1)))   # symmetric adjacency

    # GraphConv weights: torch.randn([input_dim, output_dim]) -> deterministic normal init.
    w1 = jax.random.normal(k3, (input_dim, hidden_dim), dtype=jnp.float32)
    w2 = jax.random.normal(k4, (hidden_dim, hidden_dim), dtype=jnp.float32)

    # BatchNorm1d default affine params: gamma=1, beta=0 (shape [N], stored as [N, 1]).
    g1 = jnp.ones((N, 1), dtype=jnp.float32)
    b1 = jnp.zeros((N, 1), dtype=jnp.float32)
    g2 = jnp.ones((N, 1), dtype=jnp.float32)
    b2 = jnp.zeros((N, 1), dtype=jnp.float32)

    out = grf_conv_unit(feature, adj, w1, w2, g1, b1, g2, b2)
    jax.block_until_ready(out)

    ref = grf_conv_unit_ref(feature, adj, w1, w2, g1, b1, g2, b2)
    assert out.shape == (B, hidden_dim)
    assert jnp.allclose(out, ref, rtol=1e-4, atol=1e-4), "mismatch vs JAX reference"

    print("KERNEL_OK")
</pallas_src>

<mosaic_0001>
module attributes {stable_mosaic.version = 11 : i64} {
  func.func @grf_conv_unit_kernel(%arg0: memref<32x16xf32, #tpu.memory_space<vmem>>, %arg1: memref<32x32xf32, #tpu.memory_space<vmem>>, %arg2: memref<16x32xf32, #tpu.memory_space<vmem>>, %arg3: memref<32x32xf32, #tpu.memory_space<vmem>>, %arg4: memref<32x4xf32, #tpu.memory_space<vmem>>, %arg5: memref<32x32xf32, #tpu.memory_space<vmem>>, %arg6: memref<2x32xf32, #tpu.memory_space<vmem>>, %arg7: memref<2x32xf32, #tpu.memory_space<vmem>>) attributes {dimension_semantics = [], scalar_prefetch = 0 : i64, scratch_operands = 0 : i64, tpu.core_type = #tpu.core_type<tc>} {
    %c0 = arith.constant 0 : index
    %c0_0 = arith.constant 0 : index
    %0 = vector.load %arg0[%c0, %c0_0] : memref<32x16xf32, #tpu.memory_space<vmem>>, vector<32x16xf32>
    %c0_1 = arith.constant 0 : index
    %c0_2 = arith.constant 0 : index
    %1 = vector.load %arg1[%c0_1, %c0_2] : memref<32x32xf32, #tpu.memory_space<vmem>>, vector<32x32xf32>
    %c0_3 = arith.constant 0 : index
    %c0_4 = arith.constant 0 : index
    %2 = vector.load %arg2[%c0_3, %c0_4] : memref<16x32xf32, #tpu.memory_space<vmem>>, vector<16x32xf32>
    %c0_5 = arith.constant 0 : index
    %c0_6 = arith.constant 0 : index
    %3 = vector.load %arg3[%c0_5, %c0_6] : memref<32x32xf32, #tpu.memory_space<vmem>>, vector<32x32xf32>
    %c0_7 = arith.constant 0 : index
    %c0_8 = arith.constant 0 : index
    %4 = vector.load %arg4[%c0_7, %c0_8] : memref<32x4xf32, #tpu.memory_space<vmem>>, vector<32x4xf32>
    %c0_9 = arith.constant 0 : index
    %c0_10 = arith.constant 0 : index
    %5 = vector.load %arg5[%c0_9, %c0_10] : memref<32x32xf32, #tpu.memory_space<vmem>>, vector<32x32xf32>
    %c0_11 = arith.constant 0 : index
    %c0_12 = arith.constant 0 : index
    %6 = vector.load %arg6[%c0_11, %c0_12] : memref<2x32xf32, #tpu.memory_space<vmem>>, vector<2x32xf32>
    %7 = vector.extract_strided_slice %4 {offsets = [0, 0], sizes = [32, 1], strides = [1, 1]} : vector<32x4xf32> to vector<32x1xf32>
    %8 = vector.extract_strided_slice %4 {offsets = [0, 1], sizes = [32, 1], strides = [1, 1]} : vector<32x4xf32> to vector<32x1xf32>
    %9 = vector.extract_strided_slice %4 {offsets = [0, 2], sizes = [32, 1], strides = [1, 1]} : vector<32x4xf32> to vector<32x1xf32>
    %10 = vector.extract_strided_slice %4 {offsets = [0, 3], sizes = [32, 1], strides = [1, 1]} : vector<32x4xf32> to vector<32x1xf32>
    %cst = arith.constant 1.000000e+00 : f32
    %11 = vector.broadcast %cst : f32 to vector<32x1xf32>
    %cst_13 = arith.constant dense<0.000000e+00> : vector<32x16xf32>
    %12 = tpu.matmul %1, %0, %cst_13 {dimension_numbers = #tpu.dot_dimension_numbers<[1], [0], [0], [1], [0, 0, 1, 1], [], []>} : vector<32x32xf32>, vector<32x16xf32>, vector<32x16xf32> -> vector<32x16xf32>
    %cst_14 = arith.constant dense<0.000000e+00> : vector<32x32xf32>
    %13 = tpu.matmul %12, %2, %cst_14 {dimension_numbers = #tpu.dot_dimension_numbers<[1], [0], [0], [1], [0, 0, 1, 1], [], []>} : vector<32x16xf32>, vector<16x32xf32>, vector<32x32xf32> -> vector<32x32xf32>
    %cst_15 = arith.constant dense<0.000000e+00> : vector<32x1xf32>
    %14 = tpu.matmul %13, %11, %cst_15 {dimension_numbers = #tpu.dot_dimension_numbers<[1], [0], [0], [1], [0, 0, 1, 1], [], []>} : vector<32x32xf32>, vector<32x1xf32>, vector<32x1xf32> -> vector<32x1xf32>
    %cst_16 = arith.constant dense<0.000000e+00> : vector<32x1xf32>
    %15 = tpu.matmul %5, %14, %cst_16 {dimension_numbers = #tpu.dot_dimension_numbers<[1], [0], [0], [1], [0, 0, 1, 1], [], []>} : vector<32x32xf32>, vector<32x1xf32>, vector<32x1xf32> -> vector<32x1xf32>
    %16 = vector.broadcast %15 : vector<32x1xf32> to vector<32x32xf32>
    %17 = arith.subf %13, %16 : vector<32x32xf32>
    %18 = arith.mulf %17, %17 : vector<32x32xf32>
    %cst_17 = arith.constant dense<0.000000e+00> : vector<32x1xf32>
    %19 = tpu.matmul %18, %11, %cst_17 {dimension_numbers = #tpu.dot_dimension_numbers<[1], [0], [0], [1], [0, 0, 1, 1], [], []>} : vector<32x32xf32>, vector<32x1xf32>, vector<32x1xf32> -> vector<32x1xf32>
    %cst_18 = arith.constant dense<0.000000e+00> : vector<32x1xf32>
    %20 = tpu.matmul %5, %19, %cst_18 {dimension_numbers = #tpu.dot_dimension_numbers<[1], [0], [0], [1], [0, 0, 1, 1], [], []>} : vector<32x32xf32>, vector<32x1xf32>, vector<32x1xf32> -> vector<32x1xf32>
    %cst_19 = arith.constant 9.99999974E-6 : f32
    %21 = vector.broadcast %cst_19 : f32 to vector<32x1xf32>
    %22 = arith.addf %20, %21 : vector<32x1xf32>
    %23 = math.rsqrt %22 : vector<32x1xf32>
    %24 = arith.mulf %23, %7 : vector<32x1xf32>
    %25 = arith.mulf %15, %24 : vector<32x1xf32>
    %26 = arith.subf %8, %25 : vector<32x1xf32>
    %27 = vector.broadcast %24 : vector<32x1xf32> to vector<32x32xf32>
    %28 = arith.mulf %13, %27 : vector<32x32xf32>
    %29 = vector.broadcast %26 : vector<32x1xf32> to vector<32x32xf32>
    %30 = arith.addf %28, %29 : vector<32x32xf32>
    %cst_20 = arith.constant 0.000000e+00 : f32
    %31 = vector.broadcast %cst_20 : f32 to vector<32x32xf32>
    %32 = arith.maximumf %30, %31 : vector<32x32xf32>
    %cst_21 = arith.constant dense<0.000000e+00> : vector<32x32xf32>
    %33 = tpu.matmul %1, %32, %cst_21 {dimension_numbers = #tpu.dot_dimension_numbers<[1], [0], [0], [1], [0, 0, 1, 1], [], []>} : vector<32x32xf32>, vector<32x32xf32>, vector<32x32xf32> -> vector<32x32xf32>
    %cst_22 = arith.constant dense<0.000000e+00> : vector<32x32xf32>
    %34 = tpu.matmul %33, %3, %cst_22 {dimension_numbers = #tpu.dot_dimension_numbers<[1], [0], [0], [1], [0, 0, 1, 1], [], []>} : vector<32x32xf32>, vector<32x32xf32>, vector<32x32xf32> -> vector<32x32xf32>
    %cst_23 = arith.constant dense<0.000000e+00> : vector<32x1xf32>
    %35 = tpu.matmul %34, %11, %cst_23 {dimension_numbers = #tpu.dot_dimension_numbers<[1], [0], [0], [1], [0, 0, 1, 1], [], []>} : vector<32x32xf32>, vector<32x1xf32>, vector<32x1xf32> -> vector<32x1xf32>
    %cst_24 = arith.constant dense<0.000000e+00> : vector<32x1xf32>
    %36 = tpu.matmul %5, %35, %cst_24 {dimension_numbers = #tpu.dot_dimension_numbers<[1], [0], [0], [1], [0, 0, 1, 1], [], []>} : vector<32x32xf32>, vector<32x1xf32>, vector<32x1xf32> -> vector<32x1xf32>
    %37 = vector.broadcast %36 : vector<32x1xf32> to vector<32x32xf32>
    %38 = arith.subf %34, %37 : vector<32x32xf32>
    %39 = arith.mulf %38, %38 : vector<32x32xf32>
    %cst_25 = arith.constant dense<0.000000e+00> : vector<32x1xf32>
    %40 = tpu.matmul %39, %11, %cst_25 {dimension_numbers = #tpu.dot_dimension_numbers<[1], [0], [0], [1], [0, 0, 1, 1], [], []>} : vector<32x32xf32>, vector<32x1xf32>, vector<32x1xf32> -> vector<32x1xf32>
    %cst_26 = arith.constant dense<0.000000e+00> : vector<32x1xf32>
    %41 = tpu.matmul %5, %40, %cst_26 {dimension_numbers = #tpu.dot_dimension_numbers<[1], [0], [0], [1], [0, 0, 1, 1], [], []>} : vector<32x32xf32>, vector<32x1xf32>, vector<32x1xf32> -> vector<32x1xf32>
    %cst_27 = arith.constant 9.99999974E-6 : f32
    %42 = vector.broadcast %cst_27 : f32 to vector<32x1xf32>
    %43 = arith.addf %41, %42 : vector<32x1xf32>
    %44 = math.rsqrt %43 : vector<32x1xf32>
    %45 = arith.mulf %44, %9 : vector<32x1xf32>
    %46 = arith.mulf %36, %45 : vector<32x1xf32>
    %47 = arith.subf %10, %46 : vector<32x1xf32>
    %48 = vector.broadcast %45 : vector<32x1xf32> to vector<32x32xf32>
    %49 = arith.mulf %34, %48 : vector<32x32xf32>
    %50 = vector.broadcast %47 : vector<32x1xf32> to vector<32x32xf32>
    %51 = arith.addf %49, %50 : vector<32x32xf32>
    %cst_28 = arith.constant dense<0.000000e+00> : vector<2x32xf32>
    %52 = tpu.matmul %6, %51, %cst_28 {dimension_numbers = #tpu.dot_dimension_numbers<[1], [0], [0], [1], [0, 0, 1, 1], [], []>} : vector<2x32xf32>, vector<32x32xf32>, vector<2x32xf32> -> vector<2x32xf32>
    %c0_29 = arith.constant 0 : index
    %c0_30 = arith.constant 0 : index
    %53 = vector.load %arg7[%c0_29, %c0_30] : memref<2x32xf32, #tpu.memory_space<vmem>>, vector<2x32xf32>
    tpu.vector_store %arg7[%c0_29, %c0_30], %52 {strides = array<i32>} : memref<2x32xf32, #tpu.memory_space<vmem>>, vector<2x32xf32>,
    return
  }
}

</mosaic_0001>

<bundles_post_ra>
// kernel: tpu_custom_call.1
= control target key start
LH: loop header
LB: loop body
LE: loop exit
PB: predicated region body
PF: predicated region fallthrough
CT: control target
= control target key end

     0   :  { %12 = vsyncpa [#allocation3], 0  ;;  %s1329_s0 = inlined_call_operand.vmem [shape: f32[32,16], index: 0, kind: input, shape index: {}]   ;;  %s1330_s1 = inlined_call_operand.vmem [shape: f32[32,32], index: 1, kind: input, shape index: {}]   ;;  %s1331_s2 = inlined_call_operand.vmem [shape: f32[16,32], index: 2, kind: input, shape index: {}]   ;;  %s1332_s3 = inlined_call_operand.vmem [shape: f32[32,32], index: 3, kind: input, shape index: {}]   ;;  %s1333_s4 = inlined_call_operand.vmem [shape: f32[32,4], index: 4, kind: input, shape index: {}]   ;;  %s1334_s5 = inlined_call_operand.hbm [shape: f32[32,32], index: 5, kind: input, shape index: {}]   ;;  %s1335_s6 = inlined_call_operand.vmem [shape: f32[2,32], index: 6, kind: input, shape index: {}]   ;;  %s1336_s7 = inlined_call_operand.hbm [shape: f32[2,32], index: 7, kind: output, shape index: {}]  }
   0x1   :  { %13 = vsyncpa [#allocation4], 0  ;;  %s28_s26 = sshll.u32 %s1334_s5, 4  ;;  %s1003_s27 = smov [#allocation2]   ;;  %s29_s26 = int_to_ptr.hbm [resolvable:$true] %s28_s26 }
   0x2   :  { %s30_s28 = sshll.u32 %s1003_s27, 4  ;;  %s1004_s29 = smov 128   ;;  %s31_s28 = int_to_ptr.vmem [resolvable:$true] %s30_s28 }
   0x3   :  { %s1005_s30 = smov 8  }
   0x4   :  { %36 = dma.hbm_to_vmem [thread:$0]  %s29_s26, 512, %s31_s28, [#allocation3], %s1004_s29, %s1004_s29, %s1005_s30  }
   0x5   :  { %999 = dma.done.wait [#allocation3], 512  }
   0x6   :  { %1000 = vsyncadd [#allocation3], 4294966784  ;;  %v46_v0 = vld [vmem:[%s1329_s0 + $0x18] sm:$0xff]  ;;  %v45_v1 = vld [vmem:[%s1329_s0 + $0x10] sm:$0xff]  ;;  %vm66_vm0 = vcmask 261120   ;;  %v1006_v10 = vmov 1.0  }
   0x7   :  { %91 = vmatpush.msra.mxu0 %v46_v0  ;;  %v44_v2 = vld [vmem:[%s1329_s0 + $0x8] sm:$0xff]  ;;  %v43_v4 = vld [vmem:[%s1329_s0] sm:$0xff]  ;;  %v1089_v7 = vld [vmem:[%s1330_s1 + $0x10] sm:$0xff]  ;;  %174 = vmatpush.msra.mxu2 %v1006_v10  ;;  %vm108_vm1 = vcmask 130048   ;;  %v1007_v23 = vmov 0   ;;  %s1008_s26 = smov 1  }
   0x8   :  { %v52_v3 = vld [vmem:[%s1331_s2 + $0x8] sm:$0xff]  ;;  %v1075_v5 = vld [vmem:[%s1330_s1] sm:$0xff]  ;;  %v1096_v8 = vld [vmem:[%s1330_s1 + $0x18] sm:$0xff]  ;;  %922 = vset.pattern.permute.xlu0 %v1007_v23  ;;  %923 = vset.pattern.permute.xlu1 %v1007_v23  ;;  %s1011_s16 = smov 3   ;;  %s1013_s19 = smov [#allocation5]  }
   0x9   :  { %92 = vmatpush.msra.mxu0 %v45_v1  ;;  %135 = vmatpush.msra.mxu1 %v52_v3  ;;  %v1082_v6 = vld [vmem:[%s1330_s1 + $0x8] sm:$0xff]  ;;  %v51_v9 = vld [vmem:[%s1331_s2] sm:$0xff]  ;;  %v1146_v26 = vld [vmem:[#allocation2 + $0x10] sm:$0xff]  ;;  %s850_s20 = sshll.u32 %s1013_s19, 4  ;;  %s852_s22 = sshll.u32 %s1336_s7, 4  ;;  %s851_s20 = int_to_ptr.vmem [resolvable:$true] %s850_s20  ;;  %s853_s22 = int_to_ptr.hbm [resolvable:$true] %s852_s22 }
   0xa   :  { %175 = vmatpush.msra.mxu2 %v1006_v10  ;;  %924 = vset.pattern.permute.xlu2 %v1007_v23  ;;  %v1138_v24 = vld [vmem:[#allocation2] sm:$0xff]  ;;  %v1142_v25 = vld [vmem:[#allocation2 + $0x8] sm:$0xff]  ;;  %v1150_v27 = vld [vmem:[#allocation2 + $0x18] sm:$0xff] }
   0xb   :  { %93 = vmatpush.msra.mxu0 %v44_v2  ;;  %136 = vmatpush.msra.mxu1 %v51_v9  ;;  %v1182_v62 = vld [vmem:[%s1333_s4] sm:$0xff] }
   0xc   :  { %176 = vmatpush.msra.mxu2 %v1006_v10 }
   0xd   :  { %94 = vmatpush.msra.mxu0 %v43_v4  ;;  %284 = vmatpush.msrb.mxu1 %v1006_v10 }
   0xe   :  { %862 = vmatmul.msk.f32.vlgmr.msra.gmra.mxu0 %vm66_vm0, %v1075_v5  ;;  %177 = vmatpush.msra.mxu2 %v1006_v10 }
   0xf   :  { %285 = vmatpush.msrb.mxu1 %v1006_v10 }
  0x11   :  { %286 = vmatpush.msrb.mxu1 %v1006_v10 }
  0x13   :  { %287 = vmatpush.msrb.mxu1 %v1006_v10 }
  0x16   :  { %863 = vmatmul.msk.f32.gmra.mxu0 %vm66_vm0, %v1082_v6 }
  0x1e   :  { %864 = vmatmul.msk.f32.gmra.mxu0 %vm66_vm0, %v1089_v7 }
  0x26   :  { %865 = vmatmul.msk.f32.gmra.mxu0 %vm66_vm0, %v1096_v8 }
  0x8b   :  { %v96_v11 = vpop.f32.mrf.mxu0 }
  0x8c   :  { %866 = vmatmul.msk.f32.vlgmr.msra.gmra.mxu1 %vm108_vm1, %v96_v11 }
  0x8d   :  { %544 = vmatpush.msra.mxu1 %v1006_v10 }
  0x8f   :  { %545 = vmatpush.msra.mxu1 %v1006_v10 }
  0x91   :  { %546 = vmatpush.msra.mxu1 %v1006_v10 }
  0x93   :  { %v99_v12 = vpop.f32.mrf.mxu0  ;;  %547 = vmatpush.msra.mxu1 %v1006_v10 }
  0x94   :  { %867 = vmatmul.msk.f32.gmra.mxu1 %vm108_vm1, %v99_v12 }
  0x9b   :  { %v102_v13 = vpop.f32.mrf.mxu0 }
  0x9c   :  { %868 = vmatmul.msk.f32.gmra.mxu1 %vm108_vm1, %v102_v13 }
  0xa3   :  { %v105_v14 = vpop.f32.mrf.mxu0 }
  0xa4   :  { %869 = vmatmul.msk.f32.gmra.mxu1 %vm108_vm1, %v105_v14 }
 0x109   :  { %v1119_v15 = vpop.f32.mrf.mxu1 }
 0x10a   :  { %870 = vmatmul.msk.f32.vlgmr.msra.gmra.mxu2 %vm66_vm0, %v1119_v15 }
 0x111   :  { %v1123_v16 = vpop.f32.mrf.mxu1 }
 0x112   :  { %871 = vmatmul.msk.f32.gmra.mxu2 %vm66_vm0, %v1123_v16 }
 0x119   :  { %v1127_v17 = vpop.f32.mrf.mxu1 }
 0x11a   :  { %872 = vmatmul.msk.f32.gmra.mxu2 %vm66_vm0, %v1127_v17 }
 0x121   :  { %v1131_v18 = vpop.f32.mrf.mxu1 }
 0x122   :  { %873 = vmatmul.msk.f32.gmra.mxu2 %vm66_vm0, %v1131_v18 }
 0x18d   :  { %v179_v19 = vpop.f32.mrf.mxu2 }
 0x195   :  { %v182_v20 = vpop.f32.mrf.mxu2 }
 0x19d   :  { %v185_v21 = vpop.f32.mrf.mxu2 }
 0x1a5   :  { %v188_v22 = vpop.f32.mrf.mxu2 }
 0x1a6   :  { %215 = vmatpush.msra.mxu3 %v188_v22 }
 0x1a8   :  { %216 = vmatpush.msra.mxu3 %v185_v21 }
 0x1aa   :  { %217 = vmatpush.msra.mxu3 %v182_v20 }
 0x1ac   :  { %218 = vmatpush.msra.mxu3 %v179_v19  ;;  %v1189_v19 = vld [vmem:[%s1333_s4 + $0x8] sm:$0xff] }
 0x1ad   :  { %874 = vmatmul.msk.f32.vlgmr.msra.gmra.mxu3 %vm66_vm0, %v1138_v24 }
 0x1b5   :  { %875 = vmatmul.msk.f32.gmra.mxu3 %vm66_vm0, %v1142_v25 }
 0x1bd   :  { %876 = vmatmul.msk.f32.gmra.mxu3 %vm66_vm0, %v1146_v26 }
 0x1c5   :  { %877 = vmatmul.msk.f32.gmra.mxu3 %vm66_vm0, %v1150_v27 }
 0x230   :  { %v220_v28 = vpop.f32.mrf.mxu3 }
 0x231   :  { %234 = vperm.xlu0 %922, %v220_v28  }
 0x238   :  { %v1154_v29 = vpop.f32.mrf.mxu3 }
 0x239   :  { %239 = vperm.xlu0 %922, %v1154_v29  }
 0x240   :  { %v1157_v30 = vpop.f32.mrf.mxu3 }
 0x241   :  { %244 = vperm.xlu1 %923, %v1157_v30  }
 0x248   :  { %v1160_v31 = vpop.f32.mrf.mxu3 }
 0x249   :  { %249 = vperm.xlu1 %923, %v1160_v31  }
 0x2a3   :  { %v235_v32 = vpop.permute.xlu0 %234 }
 0x2a4   :  { %v252_v33 = vsub.f32 %v1119_v15, %v235_v32 }
 0x2a6   :  { %v256_v34 = vmul.f32 %v252_v33, %v252_v33 }
 0x2a8   :  { %878 = vmatmul.msk.f32.vlgmr.msrb.gmra.mxu1 %vm66_vm0, %v256_v34 }
 0x2ab   :  { %v240_v35 = vpop.permute.xlu0 %239 }
 0x2ac   :  { %v253_v36 = vsub.f32 %v1123_v16, %v240_v35 }
 0x2ae   :  { %v257_v37 = vmul.f32 %v253_v36, %v253_v36 }
 0x2b0   :  { %879 = vmatmul.msk.f32.gmra.mxu1 %vm66_vm0, %v257_v37 }
 0x2b3   :  { %v245_v38 = vpop.permute.xlu1 %244 }
 0x2b4   :  { %v254_v39 = vsub.f32 %v1127_v17, %v245_v38  ;;  %v1197_v38 = vld [vmem:[%s1333_s4 + $0x10] sm:$0xff] }
 0x2b6   :  { %v258_v40 = vmul.f32 %v254_v39, %v254_v39 }
 0x2b8   :  { %880 = vmatmul.msk.f32.gmra.mxu1 %vm66_vm0, %v258_v40 }
 0x2bb   :  { %v250_v41 = vpop.permute.xlu1 %249 }
 0x2bc   :  { %v255_v42 = vsub.f32 %v1131_v18, %v250_v41 }
 0x2be   :  { %v259_v43 = vmul.f32 %v255_v42, %v255_v42  ;;  %v1203_v42 = vld [vmem:[%s1333_s4 + $0x18] sm:$0xff] }
 0x2c0   :  { %881 = vmatmul.msk.f32.gmra.mxu1 %vm66_vm0, %v259_v43 }
 0x325   :  { %v289_v44 = vpop.f32.mrf.mxu1 }
 0x32d   :  { %v292_v45 = vpop.f32.mrf.mxu1 }
 0x335   :  { %v295_v46 = vpop.f32.mrf.mxu1 }
 0x33d   :  { %v298_v47 = vpop.f32.mrf.mxu1 }
 0x33e   :  { %313 = vmatpush.msrb.mxu0 %v298_v47 }
 0x340   :  { %314 = vmatpush.msrb.mxu0 %v295_v46 }
 0x342   :  { %315 = vmatpush.msrb.mxu0 %v292_v45 }
 0x344   :  { %316 = vmatpush.msrb.mxu0 %v289_v44 }
 0x345   :  { %882 = vmatmul.msk.f32.vlgmr.msrb.gmra.mxu0 %vm66_vm0, %v1138_v24 }
 0x34d   :  { %883 = vmatmul.msk.f32.gmra.mxu0 %vm66_vm0, %v1142_v25 }
 0x355   :  { %884 = vmatmul.msk.f32.gmra.mxu0 %vm66_vm0, %v1146_v26 }
 0x35d   :  { %885 = vmatmul.msk.f32.gmra.mxu0 %vm66_vm0, %v1150_v27 }
 0x3c2   :  { %v318_v48 = vpop.f32.mrf.mxu0 }
 0x3c3   :  { %v319_v49 = vadd.f32 1e-05, %v318_v48  ;;  %v1009_v48 = vmov 1  }
 0x3c5   :  { %935 = vrsqrt.f32 %v319_v49  ;;  %vm336_vm3 = vweird.f32 %v319_v49 }
 0x3ca   :  { %v321_v50 = vpop.f32.mrf.mxu0 }
 0x3cb   :  { %v936_v51 = vpop.eup %935  ;;  %v322_v52 = vadd.f32 1e-05, %v321_v50 }
 0x3cc   :  { %v331_v53 = vmul.f32 %v936_v51, %v319_v49  ;;  %vm337_vm2 = vweird.f32 %v936_v51 }
 0x3cd   :  { %937 = vrsqrt.f32 %v322_v52  ;;  %vm338_vm4 = vmor %vm336_vm3, %vm337_vm2  ;;  %vm346_vm6 = vweird.f32 %v322_v52 }
 0x3ce   :  { %v332_v54 = vmul.f32 %v936_v51, %v331_v53 }
 0x3d0   :  { %v333_v55 = vmul.f32 0.5, %v332_v54 }
 0x3d2   :  { %v334_v56 = vsub.f32 1.5, %v333_v55  ;;  %v324_v57 = vpop.f32.mrf.mxu0 }
 0x3d3   :  { %v938_v58 = vpop.eup %937  ;;  %v325_v59 = vadd.f32 1e-05, %v324_v57 }
 0x3d4   :  { %v335_v60 = vmul.f32 %v936_v51, %v334_v56  ;;  %v341_v61 = vmul.f32 %v938_v58, %v322_v52  ;;  %vm347_vm5 = vweird.f32 %v938_v58 }
 0x3d5   :  { %939 = vrsqrt.f32 %v325_v59  ;;  %vm348_vm7 = vmor %vm346_vm6, %vm347_vm5  ;;  %vm356_vm9 = vweird.f32 %v325_v59 }
 0x3d6   :  { %v342_v63 = vmul.f32 %v938_v58, %v341_v61  ;;  %v339_v0 = vsel %vm338_vm4, %v936_v51, %v335_v60 }
 0x3d7   :  { %v370_v1 = vmul.f32 %v339_v0, %v1182_v62 }
 0x3d8   :  { %v343_v2 = vmul.f32 0.5, %v342_v63 }
 0x3d9   :  { %v374_v3 = vmul.f32 %v370_v1, %v220_v28 }
 0x3da   :  { %v344_v4 = vsub.f32 1.5, %v343_v2  ;;  %v327_v9 = vpop.f32.mrf.mxu0 }
 0x3db   :  { %v940_v11 = vpop.eup %939  ;;  %v328_v12 = vadd.f32 1e-05, %v327_v9  ;;  %382 = vrot.lane.b32.xlu1 %v374_v3, %s1008_s26 }
 0x3dc   :  { %v345_v13 = vmul.f32 %v938_v58, %v344_v4  ;;  %v351_v14 = vmul.f32 %v940_v11, %v325_v59  ;;  %vm357_vm8 = vweird.f32 %v940_v11 }
 0x3dd   :  { %941 = vrsqrt.f32 %v328_v12  ;;  %vm358_vm10 = vmor %vm356_vm9, %vm357_vm8  ;;  %vm366_vm12 = vweird.f32 %v328_v12 }
 0x3de   :  { %v352_v20 = vmul.f32 %v940_v11, %v351_v14  ;;  %v349_v21 = vsel %vm348_vm7, %v938_v58, %v345_v13  ;;  %v55_v13 = vld [vmem:[%s1332_s3 + $0x10] sm:$0xff] }
 0x3df   :  { %v371_v22 = vmul.f32 %v349_v21, %v1189_v19 }
 0x3e0   :  { %v353_v28 = vmul.f32 0.5, %v352_v20 }
 0x3e1   :  { %v375_v32 = vmul.f32 %v371_v22, %v1154_v29 }
 0x3e2   :  { %v354_v33 = vsub.f32 1.5, %v353_v28 }
 0x3e3   :  { %v942_v34 = vpop.eup %941  ;;  %384 = vrot.lane.b32.xlu0 %v375_v32, %s1008_s26  ;;  %400 = vperm.xlu1 %923, %v370_v1  }
 0x3e4   :  { %v361_v35 = vmul.f32 %v942_v34, %v328_v12  ;;  %v355_v36 = vmul.f32 %v940_v11, %v354_v33  ;;  %vm367_vm11 = vweird.f32 %v942_v34 }
 0x3e5   :  { %vm368_vm13 = vmor %vm366_vm12, %vm367_vm11  ;;  %vm843_vm11 = vcmask 254976  }
 0x3e6   :  { %v362_v37 = vmul.f32 %v942_v34, %v361_v35  ;;  %v359_v39 = vsel %vm358_vm10, %v940_v11, %v355_v36 }
 0x3e7   :  { %v372_v29 = vmul.f32 %v359_v39, %v1197_v38 }
 0x3e8   :  { %v363_v40 = vmul.f32 0.5, %v362_v37 }
 0x3e9   :  { %v376_v47 = vmul.f32 %v372_v29, %v1157_v30 }
 0x3ea   :  { %v364_v41 = vsub.f32 1.5, %v363_v40 }
 0x3eb   :  { %410 = vperm.xlu0 %922, %v372_v29   ;;  %927 = vset.pattern.permute.xlu1 %v1009_v48 }
 0x3ec   :  { %v365_v43 = vmul.f32 %v942_v34, %v364_v41 }
 0x3ee   :  { %v369_v44 = vsel %vm368_vm13, %v942_v34, %v365_v43 }
 0x3ef   :  { %v373_v45 = vmul.f32 %v369_v44, %v1203_v42 }
 0x3f1   :  { %v377_v46 = vmul.f32 %v373_v45, %v1160_v31 }
 0x3f3   :  { %388 = vrot.lane.b32.xlu2 %v377_v46, %s1008_s26  ;;  %925 = vset.pattern.permute.xlu0 %v1009_v48 }
 0x3fb   :  { %386 = vrot.lane.b32.xlu2 %v376_v47, %s1008_s26 }
 0x403   :  { %415 = vperm.xlu2 %924, %v373_v45  }
 0x40b   :  { %405 = vperm.xlu2 %924, %v371_v22  }
 0x413   :  { %926 = vset.pattern.permute.xlu2 %v1009_v48 }
 0x44d   :  { %v389_v49 = vpop.permute.xlu2 %388  ;;  %v383_v51 = vpop.permute.xlu1 %382 }
 0x44e   :  { %v397_v50 = vsub.f32 %v1203_v42, %v389_v49  ;;  %v394_v30 = vsub.f32 %v1182_v62, %v383_v51 }
 0x450   :  { %439 = vperm.xlu1 %927, %v397_v50  }
 0x455   :  { %v387_v52 = vpop.permute.xlu2 %386  ;;  %v385_v53 = vpop.permute.xlu0 %384 }
 0x456   :  { %v396_v31 = vsub.f32 %v1197_v38, %v387_v52  ;;  %v395_v54 = vsub.f32 %v1189_v19, %v385_v53  ;;  %v401_v56 = vpop.permute.xlu1 %400 }
 0x457   :  { %v418_v4 = vmul.f32 %v401_v56, %v1119_v15 }
 0x458   :  { %434 = vperm.xlu0 %925, %v396_v31   ;;  %429 = vperm.xlu2 %926, %v395_v54  }
 0x459   :  { %424 = vperm.xlu1 %927, %v394_v30  }
 0x45d   :  { %v416_v55 = vpop.permute.xlu2 %415  ;;  %v411_v59 = vpop.permute.xlu0 %410 }
 0x45e   :  { %v421_v58 = vmul.f32 %v416_v55, %v1131_v18  ;;  %v420_v1 = vmul.f32 %v411_v59, %v1127_v17  ;;  %v56_v18 = vld [vmem:[%s1332_s3 + $0x18] sm:$0xff] }
 0x45f   :  { %503 = vmatpush.msrb.mxu3 %v56_v18 }
 0x460   :  { %928 = vset.pattern.permute.xlu2 %v1007_v23  ;;  %929 = vset.pattern.permute.xlu0 %v1007_v23 }
 0x461   :  { %930 = vset.pattern.permute.xlu1 %v1007_v23  ;;  %504 = vmatpush.msrb.mxu3 %v55_v13 }
 0x465   :  { %v406_v57 = vpop.permute.xlu2 %405 }
 0x466   :  { %v419_v2 = vmul.f32 %v406_v57, %v1123_v16  ;;  %v54_v16 = vld [vmem:[%s1332_s3 + $0x8] sm:$0xff] }
 0x467   :  { %505 = vmatpush.msrb.mxu3 %v54_v16 }
 0x4b2   :  { %v430_v0 = vpop.permute.xlu2 %429 }
 0x4b3   :  { %v443_v9 = vadd.f32 %v430_v0, %v419_v2 }
 0x4b5   :  { %v447_v17 = vmax.f32 %v443_v9, 0.0 }
 0x4c2   :  { %v440_v60 = vpop.permute.xlu1 %439 }
 0x4c3   :  { %v445_v61 = vadd.f32 %v440_v60, %v421_v58 }
 0x4c5   :  { %v449_v63 = vmax.f32 %v445_v61, 0.0 }
 0x4c7   :  { %462 = vmatpush.msrb.mxu2 %v449_v63 }
 0x4ca   :  { %v435_v3 = vpop.permute.xlu0 %434 }
 0x4cb   :  { %v444_v11 = vadd.f32 %v435_v3, %v420_v1  ;;  %v425_v12 = vpop.permute.xlu1 %424 }
 0x4cc   :  { %v442_v20 = vadd.f32 %v425_v12, %v418_v4 }
 0x4cd   :  { %v448_v14 = vmax.f32 %v444_v11, 0.0 }
 0x4ce   :  { %v446_v15 = vmax.f32 %v442_v20, 0.0 }
 0x4cf   :  { %463 = vmatpush.msrb.mxu2 %v448_v14 }
 0x4d1   :  { %464 = vmatpush.msrb.mxu2 %v447_v17 }
 0x4d3   :  { %465 = vmatpush.msrb.mxu2 %v446_v15 }
 0x4d4   :  { %886 = vmatmul.msk.f32.vlgmr.msrb.gmra.mxu2 %vm66_vm0, %v1075_v5  ;;  %v53_v5 = vld [vmem:[%s1332_s3] sm:$0xff]  ;;  %s1010_s3 = smov 126  }
 0x4d5   :  { %642 = vmatpush.msra.mxu2 %v1006_v10  ;;  %506 = vmatpush.msrb.mxu3 %v53_v5 }
 0x4d7   :  { %643 = vmatpush.msra.mxu2 %v1006_v10 }
 0x4d9   :  { %644 = vmatpush.msra.mxu2 %v1006_v10 }
 0x4db   :  { %645 = vmatpush.msra.mxu2 %v1006_v10 }
 0x4dc   :  { %887 = vmatmul.msk.f32.gmra.mxu2 %vm66_vm0, %v1082_v6 }
 0x4e4   :  { %888 = vmatmul.msk.f32.gmra.mxu2 %vm66_vm0, %v1089_v7 }
 0x4ec   :  { %889 = vmatmul.msk.f32.gmra.mxu2 %vm66_vm0, %v1096_v8 }
 0x557   :  { %v467_v21 = vpop.f32.mrf.mxu2 }
 0x558   :  { %890 = vmatmul.msk.f32.vlgmr.msrb.gmra.mxu3 %vm66_vm0, %v467_v21 }
 0x55f   :  { %v470_v22 = vpop.f32.mrf.mxu2 }
 0x560   :  { %891 = vmatmul.msk.f32.gmra.mxu3 %vm66_vm0, %v470_v22 }
 0x567   :  { %v473_v10 = vpop.f32.mrf.mxu2 }
 0x568   :  { %892 = vmatmul.msk.f32.gmra.mxu3 %vm66_vm0, %v473_v10 }
 0x56f   :  { %v476_v6 = vpop.f32.mrf.mxu2 }
 0x570   :  { %893 = vmatmul.msk.f32.gmra.mxu3 %vm66_vm0, %v476_v6 }
 0x5db   :  { %v1249_v7 = vpop.f32.mrf.mxu3 }
 0x5dc   :  { %894 = vmatmul.msk.f32.vlgmr.msra.gmra.mxu1 %vm66_vm0, %v1249_v7 }
 0x5e3   :  { %v1253_v8 = vpop.f32.mrf.mxu3 }
 0x5e4   :  { %895 = vmatmul.msk.f32.gmra.mxu1 %vm66_vm0, %v1253_v8 }
 0x5eb   :  { %v1257_v28 = vpop.f32.mrf.mxu3 }
 0x5ec   :  { %896 = vmatmul.msk.f32.gmra.mxu1 %vm66_vm0, %v1257_v28 }
 0x5f3   :  { %v1261_v32 = vpop.f32.mrf.mxu3 }
 0x5f4   :  { %897 = vmatmul.msk.f32.gmra.mxu1 %vm66_vm0, %v1261_v32 }
 0x659   :  { %v549_v33 = vpop.f32.mrf.mxu1 }
 0x661   :  { %v552_v34 = vpop.f32.mrf.mxu1 }
 0x669   :  { %v555_v35 = vpop.f32.mrf.mxu1 }
 0x671   :  { %v558_v36 = vpop.f32.mrf.mxu1 }
 0x672   :  { %573 = vmatpush.msra.mxu0 %v558_v36 }
 0x674   :  { %574 = vmatpush.msra.mxu0 %v555_v35 }
 0x676   :  { %575 = vmatpush.msra.mxu0 %v552_v34 }
 0x678   :  { %576 = vmatpush.msra.mxu0 %v549_v33 }
 0x679   :  { %898 = vmatmul.msk.f32.vlgmr.msra.gmra.mxu0 %vm66_vm0, %v1138_v24 }
 0x681   :  { %899 = vmatmul.msk.f32.gmra.mxu0 %vm66_vm0, %v1142_v25 }
 0x689   :  { %900 = vmatmul.msk.f32.gmra.mxu0 %vm66_vm0, %v1146_v26 }
 0x691   :  { %901 = vmatmul.msk.f32.gmra.mxu0 %vm66_vm0, %v1150_v27 }
 0x6f6   :  { %v1273_v37 = vpop.f32.mrf.mxu0 }
 0x6f7   :  { %592 = vperm.xlu2 %928, %v1273_v37  }
 0x6fe   :  { %v1276_v39 = vpop.f32.mrf.mxu0 }
 0x6ff   :  { %597 = vperm.xlu0 %929, %v1276_v39  }
 0x706   :  { %v1279_v40 = vpop.f32.mrf.mxu0 }
 0x707   :  { %602 = vperm.xlu1 %930, %v1279_v40   ;;  %734 = vrot.lane.b32.xlu0 %v1189_v19, %s1010_s3 }
 0x70e   :  { %v1282_v29 = vpop.f32.mrf.mxu0 }
 0x70f   :  { %607 = vperm.xlu2 %928, %v1282_v29   ;;  %738 = vrot.lane.b32.xlu1 %v1203_v42, %s1010_s3 }
 0x717   :  { %736 = vrot.lane.b32.xlu2 %v1197_v38, %s1010_s3  ;;  %732 = vrot.lane.b32.xlu1 %v1182_v62, %s1010_s3 }
 0x751   :  { %v593_v41 = vpop.permute.xlu2 %592 }
 0x752   :  { %v610_v43 = vsub.f32 %v1249_v7, %v593_v41 }
 0x754   :  { %v614_v44 = vmul.f32 %v610_v43, %v610_v43 }
 0x756   :  { %902 = vmatmul.msk.f32.vlgmr.msra.gmra.mxu2 %vm66_vm0, %v614_v44 }
 0x769   :  { %v608_v51 = vpop.permute.xlu2 %607 }
 0x76a   :  { %v613_v52 = vsub.f32 %v1261_v32, %v608_v51 }
 0x76c   :  { %v617_v53 = vmul.f32 %v613_v52, %v613_v52 }
 0x771   :  { %v598_v45 = vpop.permute.xlu0 %597  ;;  %v737_v10 = vpop.permute.xlu2 %736 }
 0x772   :  { %v611_v46 = vsub.f32 %v1253_v8, %v598_v45 }
 0x774   :  { %v615_v47 = vmul.f32 %v611_v46, %v611_v46 }
 0x776   :  { %903 = vmatmul.msk.f32.gmra.mxu2 %vm66_vm0, %v615_v47 }
 0x779   :  { %v603_v48 = vpop.permute.xlu1 %602  ;;  %v735_v9 = vpop.permute.xlu0 %734 }
 0x77a   :  { %v612_v49 = vsub.f32 %v1257_v28, %v603_v48 }
 0x77c   :  { %v616_v50 = vmul.f32 %v612_v49, %v612_v49 }
 0x77e   :  { %904 = vmatmul.msk.f32.gmra.mxu2 %vm66_vm0, %v616_v50 }
 0x781   :  { %v739_v36 = vpop.permute.xlu1 %738 }
 0x786   :  { %905 = vmatmul.msk.f32.gmra.mxu2 %vm66_vm0, %v617_v53  ;;  %v1012_v53 = vmov 3  }
 0x787   :  { %932 = vset.pattern.permute.xlu2 %v1012_v53 }
 0x789   :  { %v733_v50 = vpop.permute.xlu1 %732 }
 0x7d9   :  { %v647_v31 = vpop.f32.mrf.mxu2 }
 0x7f9   :  { %v650_v54 = vpop.f32.mrf.mxu2 }
 0x801   :  { %v653_v30 = vpop.f32.mrf.mxu2 }
 0x809   :  { %v656_v55 = vpop.f32.mrf.mxu2 }
 0x80a   :  { %671 = vmatpush.msra.mxu3 %v656_v55 }
 0x80c   :  { %672 = vmatpush.msra.mxu3 %v653_v30 }
 0x80e   :  { %673 = vmatpush.msra.mxu3 %v650_v54 }
 0x810   :  { %674 = vmatpush.msra.mxu3 %v647_v31 }
 0x811   :  { %906 = vmatmul.msk.f32.vlgmr.msra.gmra.mxu3 %vm66_vm0, %v1138_v24 }
 0x819   :  { %907 = vmatmul.msk.f32.gmra.mxu3 %vm66_vm0, %v1142_v25 }
 0x821   :  { %908 = vmatmul.msk.f32.gmra.mxu3 %vm66_vm0, %v1146_v26 }
 0x829   :  { %909 = vmatmul.msk.f32.gmra.mxu3 %vm66_vm0, %v1150_v27 }
 0x894   :  { %v676_v56 = vpop.f32.mrf.mxu3 }
 0x895   :  { %v677_v59 = vadd.f32 1e-05, %v676_v56 }
 0x897   :  { %vm694_vm9 = vweird.f32 %v677_v59 }
 0x89c   :  { %v679_v57 = vpop.f32.mrf.mxu3 }
 0x89d   :  { %v680_v58 = vadd.f32 1e-05, %v679_v57 }
 0x89f   :  { %943 = vrsqrt.f32 %v680_v58  ;;  %vm704_vm15 = vweird.f32 %v680_v58 }
 0x8a0   :  { %945 = vrsqrt.f32 %v677_v59 }
 0x8a4   :  { %v682_v60 = vpop.f32.mrf.mxu3 }
 0x8a5   :  { %v944_v61 = vpop.eup %943  ;;  %v683_v63 = vadd.f32 1e-05, %v682_v60 }
 0x8a6   :  { %v699_v0 = vmul.f32 %v944_v61, %v680_v58  ;;  %v946_v25 = vpop.eup %945  ;;  %vm705_vm14 = vweird.f32 %v944_v61 }
 0x8a7   :  { %947 = vrsqrt.f32 %v683_v63  ;;  %vm706_vm1 = vmor %vm704_vm15, %vm705_vm14  ;;  %v689_v12 = vmul.f32 %v946_v25, %v677_v59  ;;  %vm714_vm3 = vweird.f32 %v683_v63  ;;  %vm695_vm8 = vweird.f32 %v946_v25 }
 0x8a8   :  { %v700_v24 = vmul.f32 %v944_v61, %v699_v0  ;;  %vm696_vm10 = vmor %vm694_vm9, %vm695_vm8 }
 0x8a9   :  { %v690_v17 = vmul.f32 %v946_v25, %v689_v12 }
 0x8aa   :  { %v701_v1 = vmul.f32 0.5, %v700_v24 }
 0x8ab   :  { %v691_v6 = vmul.f32 0.5, %v690_v17 }
 0x8ac   :  { %v685_v2 = vpop.f32.mrf.mxu3  ;;  %v702_v3 = vsub.f32 1.5, %v701_v1 }
 0x8ad   :  { %v948_v26 = vpop.eup %947  ;;  %v686_v4 = vadd.f32 1e-05, %v685_v2  ;;  %v692_v43 = vsub.f32 1.5, %v691_v6 }
 0x8ae   :  { %v709_v27 = vmul.f32 %v948_v26, %v683_v63  ;;  %v703_v11 = vmul.f32 %v944_v61, %v702_v3  ;;  %vm715_vm2 = vweird.f32 %v948_v26  ;;  %v65_v3 = vld [vmem:[%s1335_s6] sm:$0x3] }
 0x8af   :  { %949 = vrsqrt.f32 %v686_v4  ;;  %vm716_vm4 = vmor %vm714_vm3, %vm715_vm2  ;;  %vm724_vm5 = vweird.f32 %v686_v4  ;;  %v693_v46 = vmul.f32 %v946_v25, %v692_v43 }
 0x8b0   :  { %v710_v18 = vmul.f32 %v948_v26, %v709_v27  ;;  %v707_v13 = vsel %vm706_vm1, %v944_v61, %v703_v11 }
 0x8b1   :  { %v745_v14 = vmul.f32 %v735_v9, %v707_v13  ;;  %v697_v51 = vsel %vm696_vm10, %v946_v25, %v693_v46 }
 0x8b2   :  { %v711_v20 = vmul.f32 0.5, %v710_v18 }
 0x8b3   :  { %v749_v16 = vmul.f32 %v745_v14, %v1276_v39 }
 0x8b4   :  { %v712_v15 = vsub.f32 1.5, %v711_v20 }
 0x8b5   :  { %v950_v5 = vpop.eup %949  ;;  %758 = vrot.lane.b32.xlu1 %v749_v16, %s1011_s16 }
 0x8b6   :  { %v719_v21 = vmul.f32 %v950_v5, %v686_v4  ;;  %v713_v22 = vmul.f32 %v948_v26, %v712_v15  ;;  %vm725_vm6 = vweird.f32 %v950_v5 }
 0x8b7   :  { %vm726_vm7 = vmor %vm724_vm5, %vm725_vm6 }
 0x8b8   :  { %v720_v33 = vmul.f32 %v950_v5, %v719_v21  ;;  %v717_v34 = vsel %vm716_vm4, %v948_v26, %v713_v22 }
 0x8b9   :  { %v746_v35 = vmul.f32 %v737_v10, %v717_v34 }
 0x8ba   :  { %v721_v41 = vmul.f32 0.5, %v720_v33 }
 0x8bb   :  { %v750_v39 = vmul.f32 %v746_v35, %v1279_v40  ;;  %v744_v40 = vmul.f32 %v733_v50, %v697_v51 }
 0x8bc   :  { %v722_v44 = vsub.f32 1.5, %v721_v41 }
 0x8bd   :  { %784 = vperm.xlu1 %930, %v746_v35   ;;  %760 = vrot.lane.b32.xlu0 %v750_v39, %s1011_s16  ;;  %v748_v52 = vmul.f32 %v744_v40, %v1273_v37 }
 0x8be   :  { %v723_v45 = vmul.f32 %v950_v5, %v722_v44 }
 0x8c0   :  { %v727_v47 = vsel %vm726_vm7, %v950_v5, %v723_v45 }
 0x8c1   :  { %v747_v48 = vmul.f32 %v739_v36, %v727_v47 }
 0x8c3   :  { %v751_v49 = vmul.f32 %v747_v48, %v1282_v29 }
 0x8c5   :  { %762 = vrot.lane.b32.xlu2 %v751_v49, %s1011_s16  ;;  %789 = vperm.xlu0 %929, %v747_v48  }
 0x8c6   :  { %931 = vset.pattern.permute.xlu1 %v1012_v53 }
 0x8cd   :  { %756 = vrot.lane.b32.xlu2 %v748_v52, %s1011_s16  ;;  %779 = vperm.xlu0 %929, %v745_v14  }
 0x8d5   :  { %934 = vset.pattern.permute.xlu0 %v1012_v53 }
 0x91f   :  { %v763_v31 = vpop.permute.xlu2 %762 }
 0x920   :  { %v771_v54 = vsub.f32 %v1203_v42, %v763_v31 }
 0x922   :  { %813 = vperm.xlu2 %932, %v771_v54  }
 0x927   :  { %v759_v29 = vpop.permute.xlu1 %758  ;;  %v757_v56 = vpop.permute.xlu2 %756 }
 0x928   :  { %v769_v30 = vsub.f32 %v1189_v19, %v759_v29  ;;  %v768_v57 = vsub.f32 %v1182_v62, %v757_v56 }
 0x92a   :  { %803 = vperm.xlu0 %934, %v769_v30   ;;  %933 = vset.pattern.permute.xlu2 %v1007_v23 }
 0x92b   :  { %774 = vperm.xlu2 %933, %v744_v40  }
 0x92f   :  { %v761_v55 = vpop.permute.xlu0 %760  ;;  %v785_v61 = vpop.permute.xlu1 %784 }
 0x930   :  { %v770_v37 = vsub.f32 %v1197_v38, %v761_v55  ;;  %v794_v63 = vmul.f32 %v785_v61, %v1257_v28 }
 0x932   :  { %808 = vperm.xlu1 %931, %v770_v37  }
 0x937   :  { %v790_v58 = vpop.permute.xlu0 %789 }
 0x938   :  { %v795_v59 = vmul.f32 %v790_v58, %v1261_v32 }
 0x93a   :  { %798 = vperm.xlu1 %931, %v768_v57  }
 0x93f   :  { %v780_v19 = vpop.permute.xlu0 %779 }
 0x940   :  { %v793_v24 = vmul.f32 %v780_v19, %v1253_v8 }
 0x97c   :  { %v814_v42 = vpop.permute.xlu2 %813 }
 0x97d   :  { %v819_v60 = vadd.f32 %v814_v42, %v795_v59 }
 0x97f   :  { %835 = vmatpush.msrb.mxu1 %v819_v60 }
 0x985   :  { %v775_v25 = vpop.permute.xlu2 %774 }
 0x986   :  { %v792_v62 = vmul.f32 %v775_v25, %v1249_v7 }
 0x99c   :  { %v804_v23 = vpop.permute.xlu0 %803 }
 0x99d   :  { %v817_v1 = vadd.f32 %v804_v23, %v793_v24 }
 0x9a4   :  { %v809_v0 = vpop.permute.xlu1 %808 }
 0x9a5   :  { %v818_v38 = vadd.f32 %v809_v0, %v794_v63 }
 0x9a7   :  { %836 = vmatpush.msrb.mxu1 %v818_v38 }
 0x9a9   :  { %837 = vmatpush.msrb.mxu1 %v817_v1 }
 0x9ac   :  { %v799_v2 = vpop.permute.xlu1 %798 }
 0x9ad   :  { %v816_v32 = vadd.f32 %v799_v2, %v792_v62 }
 0x9af   :  { %838 = vmatpush.msrb.mxu1 %v816_v32 }
 0x9b0   :  { %910 = vmatmul.msk.f32.vlgmr.msrb.gmra.mxu1 %vm66_vm0, %v65_v3 }
 0xa2d   :  { %v840_v8 = vpop.f32.mrf.mxu1 }
 0xa2e   :  { %844 = vst.msk [vmem:[#allocation5] sm:$0x3] %vm843_vm11, %v840_v8 }
 0xa2f   :  { %855 = dma.vmem_to_hbm [thread:$0]  %s851_s20, 32, %s853_s22, [#allocation4]  }
 0xa30   :  { %1001 = dma.done.wait [#allocation4], 32  }
 0xa31   :  { %1002 = vsyncadd [#allocation4], 4294967264 }
 0xa32   :  { %860 = vsyncpa [#allocation3], 1 }
 0xa33   :  { %861 = vsyncpa [#allocation4], 1 }

</bundles_post_ra>
